<compile_context>
chip_gen: v7x
topology: tpu7x:2x2x1
jax: 0.10.0
libtpu: 0.0.40
codegen_flags: <defaults>
</compile_context>

<pallas_src>
import functools

import jax
import jax.numpy as jnp
from jax.experimental import pallas as pl
from jax.experimental.pallas import tpu as pltpu

_CLAMP_MIN = 1e-12
_CLAMP_MAX = 1e12


def _round_up(x, m):
    return (x + m - 1) // m * m


def _center_loss_kernel(x_ref, labels_ref, centers_ref, out_ref, acc_ref,
                        *, batch_size, num_classes, block_b):
    i = pl.program_id(0)
    nsteps = pl.num_programs(0)

    @pl.when(i == 0)
    def _():
        acc_ref[...] = jnp.zeros_like(acc_ref)

    x = x_ref[...].astype(jnp.float32)          # (block_b, D)
    labels = labels_ref[...]                    # (block_b, 1) int32
    centers = centers_ref[...]                  # (C, D), resident in VMEM

    # One-hot gather of each row's center on the MXU.  Exact: 0/1 operands,
    # exactly one non-zero per row, f32 accumulation.
    cls = jax.lax.broadcasted_iota(jnp.int32, (block_b, num_classes), 1)
    onehot = (labels == cls).astype(centers.dtype)               # (block_b, C)
    c = jnp.dot(onehot, centers,
                preferred_element_type=jnp.float32)              # (block_b, D)

    # Fused squared distance: ||x - c||^2 == x_sq + c_sq - 2*xc.
    diff = x - c
    d = jnp.sum(diff * diff, axis=1, keepdims=True)              # (block_b, 1)
    d = jnp.clip(d, _CLAMP_MIN, _CLAMP_MAX)

    # Zero out padded batch rows (batch_size is a static Python int).
    row = jax.lax.broadcasted_iota(jnp.int32, (block_b, 1), 0) + i * block_b
    d = jnp.where(row < batch_size, d, 0.0)

    acc_ref[...] += jnp.sum(d, axis=0, keepdims=True)

    @pl.when(i == nsteps - 1)
    def _():
        # Each of the (C - 1) masked-out entries per real row contributes
        # exactly clamp(0) = 1e-12 to the PyTorch sum; add it analytically.
        mask_const = (num_classes - 1) * _CLAMP_MIN
        out_ref[...] = acc_ref[...] / batch_size + mask_const


def center_loss(x, centers, labels, *, block_b=None):
    """loss = sum(clamp(distmat * onehot(labels), 1e-12, 1e12)) / B"""
    B, D = x.shape
    C, Dc = centers.shape
    assert D == Dc, "feat_dim mismatch between x and centers"
    assert labels.shape[0] == B, "features.size(0) is not equal to labels.size(0)"

    labels = labels.astype(jnp.int32).reshape(B, 1)

    def _footprint(bb):
        # Resident centers + double-buffered x tile + labels + f32 temporaries
        # (gathered c, diff) + one-hot tile.
        return (C * D * centers.dtype.itemsize
                + 2 * bb * D * x.dtype.itemsize
                + 2 * bb * 4
                + 2 * bb * D * 4
                + bb * _round_up(C, 128) * 4)

    if block_b is None:
        block_b = min(_round_up(B, 8), 512)
        while block_b > 8 and _footprint(block_b) > (40 << 20):
            block_b //= 2
        block_b = max(8, _round_up(block_b, 8))

    B_pad = _round_up(B, block_b)
    if B_pad != B:
        x = jnp.pad(x, ((0, B_pad - B), (0, 0)))
        labels = jnp.pad(labels, ((0, B_pad - B), (0, 0)))
    num_tiles = B_pad // block_b

    kernel = functools.partial(
        _center_loss_kernel,
        batch_size=B,
        num_classes=C,
        block_b=block_b,
    )

    grid_spec = pltpu.PrefetchScalarGridSpec(
        num_scalar_prefetch=0,
        grid=(num_tiles,),
        in_specs=[
            pl.BlockSpec((block_b, D), lambda i: (i, 0)),   # x tile
            pl.BlockSpec((block_b, 1), lambda i: (i, 0)),   # labels tile
            pl.BlockSpec((C, D), lambda i: (0, 0)),         # resident centers
        ],
        out_specs=pl.BlockSpec((1, 1), lambda i: (0, 0)),   # scalar output
        scratch_shapes=[
            pltpu.VMEM((1, 1), jnp.float32),                # running sum
        ],
    )

    vmem_limit = int(min(max(int(1.25 * _footprint(block_b)) + (2 << 20),
                             32 << 20),
                         64 << 20))

    out = pl.pallas_call(
        kernel,
        out_shape=jax.ShapeDtypeStruct((1, 1), jnp.float32),
        grid_spec=grid_spec,
        compiler_params=pltpu.CompilerParams(
            dimension_semantics=("arbitrary",),   # accumulates across grid
            vmem_limit_bytes=vmem_limit,
        ),
    )(x, labels, centers)

    return out[0, 0]


if __name__ == "__main__":
    key = jax.random.PRNGKey(0)
    kx, kc, kl = jax.random.split(key, 3)

    # Small shapes consistent with the module (CenterLoss(num_classes, feat_dim)).
    B, C, D = 8, 16, 128
    x = jax.random.normal(kx, (B, D), dtype=jnp.float32)
    centers = jax.random.normal(kc, (C, D), dtype=jnp.float32)
    labels = jax.random.randint(kl, (B,), 0, C, dtype=jnp.int32)

    loss = center_loss(x, centers, labels)
    loss = jax.block_until_ready(loss)

    # Pure-JAX reference with identical (clamp-after-mask) semantics.
    x_sq = jnp.sum(x ** 2, axis=1, keepdims=True)
    c_sq = jnp.sum(centers ** 2, axis=1)[None, :]
    distmat = x_sq + c_sq - 2.0 * (x @ centers.T)
    mask = (labels[:, None] == jnp.arange(C)[None, :]).astype(jnp.float32)
    ref = jnp.clip(distmat * mask, _CLAMP_MIN, _CLAMP_MAX).sum() / B

    assert jnp.allclose(loss, ref, rtol=1e-3, atol=1e-5), (float(loss), float(ref))
    print("KERNEL_OK")
</pallas_src>

<mosaic_0001>
module attributes {stable_mosaic.version = 11 : i64} {
  func.func @_center_loss_kernel(%arg0: i32, %arg1: memref<8x128xf32, #tpu.memory_space<vmem>>, %arg2: memref<8x1xi32, #tpu.memory_space<vmem>>, %arg3: memref<16x128xf32, #tpu.memory_space<vmem>>, %arg4: memref<1x1xf32, #tpu.memory_space<vmem>>, %arg5: memref<1x1xf32, #tpu.memory_space<vmem>>) attributes {dimension_semantics = [#tpu.dimension_semantics<arbitrary>], iteration_bounds = array<i64: 1>, scalar_prefetch = 0 : i64, scratch_operands = 1 : i64, tpu.core_type = #tpu.core_type<tc>, window_params = [{transform_indices = @transform_0, window_bounds = array<i64: 8, 128>}, {transform_indices = @transform_1, window_bounds = array<i64: 8, 1>}, {pipeline_mode = #tpu.pipeline_mode<synchronous>, transform_indices = @transform_2, window_bounds = array<i64: 16, 128>}, {pipeline_mode = #tpu.pipeline_mode<synchronous>, transform_indices = @transform_3, window_bounds = array<i64: 1, 1>}]} {
    %c0_i32 = arith.constant 0 : i32
    %0 = arith.cmpi eq, %arg0, %c0_i32 : i32
    %1 = arith.extui %0 : i1 to i32
    %c0_i32_0 = arith.constant 0 : i32
    %2 = arith.cmpi ne, %1, %c0_i32_0 : i32
    scf.if %2 {
      %cst_18 = arith.constant 0.000000e+00 : f32
      %36 = vector.broadcast %cst_18 : f32 to vector<1x1xf32>
      %c0_19 = arith.constant 0 : index
      %c0_20 = arith.constant 0 : index
      %37 = vector.load %arg5[%c0_19, %c0_20] : memref<1x1xf32, #tpu.memory_space<vmem>>, vector<1x1xf32>
      tpu.vector_store %arg5[%c0_19, %c0_20], %36 {strides = array<i32>} : memref<1x1xf32, #tpu.memory_space<vmem>>, vector<1x1xf32>,
    } else {
    }
    %c0 = arith.constant 0 : index
    %c0_1 = arith.constant 0 : index
    %3 = vector.load %arg1[%c0, %c0_1] : memref<8x128xf32, #tpu.memory_space<vmem>>, vector<8x128xf32>
    %c0_2 = arith.constant 0 : index
    %c0_3 = arith.constant 0 : index
    %4 = vector.load %arg2[%c0_2, %c0_3] : memref<8x1xi32, #tpu.memory_space<vmem>>, vector<8x1xi32>
    %c0_4 = arith.constant 0 : index
    %c0_5 = arith.constant 0 : index
    %5 = vector.load %arg3[%c0_4, %c0_5] : memref<16x128xf32, #tpu.memory_space<vmem>>, vector<16x128xf32>
    %6 = tpu.iota {dimensions = array<i32: 1>} : vector<8x16xi32>
    %7 = vector.broadcast %4 : vector<8x1xi32> to vector<8x16xi32>
    %8 = arith.cmpi eq, %7, %6 : vector<8x16xi32>
    %9 = arith.extui %8 : vector<8x16xi1> to vector<8x16xi32>
    %10 = arith.sitofp %9 : vector<8x16xi32> to vector<8x16xf32>
    %cst = arith.constant dense<0.000000e+00> : vector<8x128xf32>
    %11 = tpu.matmul %10, %5, %cst {dimension_numbers = #tpu.dot_dimension_numbers<[1], [0], [0], [1], [0, 0, 1, 1], [], []>} : vector<8x16xf32>, vector<16x128xf32>, vector<8x128xf32> -> vector<8x128xf32>
    %12 = arith.subf %3, %11 : vector<8x128xf32>
    %13 = arith.mulf %12, %12 : vector<8x128xf32>
    %cst_6 = arith.constant dense<0.000000e+00> : vector<8xf32>
    %14 = vector.multi_reduction <add>, %13, %cst_6 [1] : vector<8x128xf32> to vector<8xf32>
    %15 = vector.shape_cast %14 : vector<8xf32> to vector<8x1xf32>
    %cst_7 = arith.constant 9.99999996E-13 : f32
    %cst_8 = arith.constant 9.99999995E+11 : f32
    %16 = vector.broadcast %cst_7 : f32 to vector<8x1xf32>
    %17 = arith.maximumf %16, %15 : vector<8x1xf32>
    %18 = vector.broadcast %cst_8 : f32 to vector<8x1xf32>
    %19 = arith.minimumf %18, %17 : vector<8x1xf32>
    %20 = tpu.iota {dimensions = array<i32: 0>} : vector<8x1xi32>
    %c8_i32 = arith.constant 8 : i32
    %21 = arith.muli %arg0, %c8_i32 : i32
    %22 = vector.broadcast %21 : i32 to vector<8x1xi32>
    %23 = arith.addi %20, %22 : vector<8x1xi32>
    %c8_i32_9 = arith.constant 8 : i32
    %24 = vector.broadcast %c8_i32_9 : i32 to vector<8x1xi32>
    %25 = arith.cmpi slt, %23, %24 : vector<8x1xi32>
    %cst_10 = arith.constant 0.000000e+00 : f32
    %26 = vector.broadcast %cst_10 : f32 to vector<8x1xf32>
    %27 = arith.select %25, %19, %26 : vector<8x1xi1>, vector<8x1xf32>
    %c0_11 = arith.constant 0 : index
    %c0_12 = arith.constant 0 : index
    %28 = vector.load %arg5[%c0_11, %c0_12] : memref<1x1xf32, #tpu.memory_space<vmem>>, vector<1x1xf32>
    %cst_13 = arith.constant dense<0.000000e+00> : vector<1xf32>
    %29 = vector.multi_reduction <add>, %27, %cst_13 [0] : vector<8x1xf32> to vector<1xf32>
    %30 = vector.shape_cast %29 : vector<1xf32> to vector<1x1xf32>
    %31 = arith.addf %28, %30 : vector<1x1xf32>
    %c0_14 = arith.constant 0 : index
    %c0_15 = arith.constant 0 : index
    %32 = vector.load %arg5[%c0_14, %c0_15] : memref<1x1xf32, #tpu.memory_space<vmem>>, vector<1x1xf32>
    tpu.vector_store %arg5[%c0_14, %c0_15], %31 {strides = array<i32>} : memref<1x1xf32, #tpu.memory_space<vmem>>, vector<1x1xf32>,
    %c0_i32_16 = arith.constant 0 : i32
    %33 = arith.cmpi eq, %arg0, %c0_i32_16 : i32
    %34 = arith.extui %33 : i1 to i32
    %c0_i32_17 = arith.constant 0 : i32
    %35 = arith.cmpi ne, %34, %c0_i32_17 : i32
    scf.if %35 {
      %c0_18 = arith.constant 0 : index
      %c0_19 = arith.constant 0 : index
      %36 = vector.load %arg5[%c0_18, %c0_19] : memref<1x1xf32, #tpu.memory_space<vmem>>, vector<1x1xf32>
      %cst_20 = arith.constant 8.000000e+00 : f32
      %37 = vector.broadcast %cst_20 : f32 to vector<1x1xf32>
      %38 = arith.divf %36, %37 : vector<1x1xf32>
      %cst_21 = arith.constant 1.500000e-11 : f32
      %39 = vector.broadcast %cst_21 : f32 to vector<1x1xf32>
      %40 = arith.addf %38, %39 : vector<1x1xf32>
      %c0_22 = arith.constant 0 : index
      %c0_23 = arith.constant 0 : index
      %41 = vector.load %arg4[%c0_22, %c0_23] : memref<1x1xf32, #tpu.memory_space<vmem>>, vector<1x1xf32>
      tpu.vector_store %arg4[%c0_22, %c0_23], %40 {strides = array<i32>} : memref<1x1xf32, #tpu.memory_space<vmem>>, vector<1x1xf32>,
    } else {
    }
    return
  }
  func.func @transform_0(%arg0: i32) -> (i32, i32) {
    %c0_i32 = arith.constant 0 : i32
    %c0_i32_0 = arith.constant 0 : i32
    return %arg0, %c0_i32 : i32, i32
  }
  func.func @transform_1(%arg0: i32) -> (i32, i32) {
    %c0_i32 = arith.constant 0 : i32
    %c0_i32_0 = arith.constant 0 : i32
    return %arg0, %c0_i32 : i32, i32
  }
  func.func @transform_2(%arg0: i32) -> (i32, i32) {
    %c0_i32 = arith.constant 0 : i32
    %c0_i32_0 = arith.constant 0 : i32
    %c0_i32_1 = arith.constant 0 : i32
    return %c0_i32, %c0_i32_0 : i32, i32
  }
  func.func @transform_3(%arg0: i32) -> (i32, i32) {
    %c0_i32 = arith.constant 0 : i32
    %c0_i32_0 = arith.constant 0 : i32
    %c0_i32_1 = arith.constant 0 : i32
    return %c0_i32, %c0_i32_0 : i32, i32
  }
}

</mosaic_0001>

<bundles_post_ra>
// kernel: tpu_custom_call.1
= control target key start
LH: loop header
LB: loop body
LE: loop exit
PB: predicated region body
PF: predicated region fallthrough
CT: control target
= control target key end

     0   :  { %8 = vsyncpa [#allocation4], 0  ;;  %s297_s0 = inlined_call_operand.hbm [shape: f32[8,128], index: 0, kind: input, shape index: {}]   ;;  %s298_s1 = inlined_call_operand.vmem [shape: s32[8,1], index: 1, kind: input, shape index: {}]   ;;  %s299_s2 = inlined_call_operand.vmem [shape: f32[16,128], index: 2, kind: input, shape index: {}]   ;;  %s300_s3 = inlined_call_operand.hbm [shape: f32[1,1], index: 3, kind: output, shape index: {}]  }
   0x1   :  { %9 = vsyncpa [#allocation5], 0  ;;  %s235_s12 = smov [#allocation3]   ;;  %s187_s16 = scalar_lea.hbm %s297_s0, 128 }
   0x2   :  { %s16_s13 = sshll.u32 %s235_s12, 4  ;;  %p188_p0 = scmp.ne.s32.totalorder %s297_s0, %s187_s16  ;;  %s17_s13 = int_to_ptr.vmem [resolvable:$true] %s16_s13 }
   0x3   :  { %p191_p1 = scmp.lt.u32.totalorder %s187_s16, %s297_s0 }
   0x5   :  { %p193_p2 = pnand %p191_p1, %p188_p0 }
   0x7   :  { %196 = shalt.err (!%p193_p2)
}
   0x8   :  { %s197_s21 = scalar_lea.vmem %s17_s13, 128  ;;  %p202_p4 = scmp.lt.s32.totalorder %s17_s13, %s17_s13 }
   0x9   :  { %p198_p3 = scmp.ne.s32.totalorder %s17_s13, %s197_s21  ;;  %p203_p5 = scmp.lt.s32.totalorder %s197_s21, %s197_s21 }
   0xb   :  { %p204_p6 = por %p203_p5, %p202_p4 }
   0xd   :  { %p205_p7 = pnand %p204_p6, %p198_p3 }
   0xf   :  { %208 = shalt.err (!%p205_p7)
}
  0x10   :  { %19 = dma.hbm_to_vmem [thread:$0]  %s297_s0, 128, %s17_s13, [#allocation4]  }
  0x11   :  { %231 = dma.done.wait [#allocation4], 128  }
  0x12   :  { %232 = vsyncadd [#allocation4], 4294967168  ;;  %v236_v0 = vmov 0   ;;  %v237_v1 = vmov 0.0|0.0   ;;  %v34_v2 = vld [vmem:[%s298_s1] sm:$0xff]  ;;  %v36_v4 = vld [vmem:[%s299_s2 + $0x8] sm:$0xff]  ;;  %v37_v7 = vlaneseq }
  0x13   :  { %186 = vset.pattern.permute.xlu0 %v236_v0  ;;  %177 = vmatprep.subr.bf16.mxu0 %v237_v1  ;;  %v35_v3 = vld [vmem:[%s299_s2] sm:$0xff]  ;;  %vm238_vm0 = vmmov 0   ;;  %v239_v6 = vmov 0.0   ;;  %vm45_vm1 = vcmask 130048   ;;  %vm31_vm3 = vcmask 0   ;;  %s240_s0 = smov [#allocation6]  }
  0x14   :  { %40 = vperm.xlu0 %186, %v34_v2   ;;  %v178_v5 = vpack.c.bf16 %v36_v4, %v35_v3  ;;  %174 = vmatprep.mubr.msk.f32.mxu0 %vm238_vm0, %v239_v6  ;;  %v38_v8 = vand.u32 127, %v37_v7  ;;  %v33_v11 = vld [vmem:[#allocation3] sm:$0xff]  ;;  %32 = vst.msk [vmem:[#allocation2] sm:$0x1] %vm31_vm3, %v239_v6  ;;  %s156_s1 = sshll.u32 %s240_s0, 4  ;;  %s157_s1 = int_to_ptr.vmem [resolvable:$true] %s156_s1 }
  0x15   :  { %s209_s2 = scalar_lea.vmem %s157_s1, 16  ;;  %s213_s30 = scalar_lea.vmem %s157_s1, 32 }
  0x16   :  { %179 = vmatpush3.bf16.msra.mxu0 %v178_v5  ;;  %p210_p8 = scmp.ne.s32.totalorder %s157_s1, %s209_s2  ;;  %p214_p9 = scmp.lt.s32.totalorder %s157_s1, %s157_s1 }
  0x17   :  { %p215_p10 = scmp.lt.s32.totalorder %s213_s30, %s209_s2 }
  0x19   :  { %p216_p11 = por %p215_p10, %p214_p9 }
  0x1b   :  { %v132_v24 = vld [vmem:[#allocation2] sm:$0x1]  ;;  %p217_p12 = pnand %p216_p11, %p210_p8 }
  0x93   :  { %v41_v9 = vpop.permute.xlu0 %40 }
  0x94   :  { %vm42_vm2 = vcmp.eq.s32.totalorder %v41_v9, %v38_v8 }
  0x95   :  { %v165_v10 = vsel %vm42_vm2, 1.0, %v239_v6 }
  0x96   :  { %175 = vmatmul.mubr.msk.f32.vlgmr.msra.gmra.mrb[0].mxu0 %vm45_vm1, %v165_v10 }
 0x169   :  { %v115_v12 = vpop.f32.mrb[0].mxu0 }
 0x16a   :  { %v119_v13 = vsub.f32 %v33_v11, %v115_v12  ;;  %v176_v14 = vpop.f32.mrb[1].mxu0 }
 0x16c   :  { %v120_v15 = vmul.f32 %v119_v13, %v119_v13 }
 0x16e   :  { %121 = vadd.xlane.f32.xlu0 %v120_v15 }
 0x1fb   :  { %v122_v16 = vpop.xlane.xlu0 %121 }
 0x1fc   :  { %v123_v17 = vmax.f32 %v122_v16, 1e-12 }
 0x1fe   :  { %v124_v18 = vmin.f32 %v123_v17, 1e+12 }
 0x200   :  { %v133_v19 = vrot.slane %v124_v18, 4 }
 0x202   :  { %v134_v20 = vadd.f32 %v133_v19, %v124_v18 }
 0x204   :  { %v135_v21 = vrot.slane %v134_v20, 2 }
 0x206   :  { %v136_v22 = vadd.f32 %v135_v21, %v134_v20 }
 0x208   :  { %v137_v23 = vrot.slane %v136_v22, 1 }
 0x20a   :  { %v138_v25 = vadd.f32 %v137_v23, %v136_v22 }
 0x20c   :  { %v139_v26 = vadd.f32 %v138_v25, %v132_v24 }
 0x20e   :  { %141 = vst.msk [vmem:[#allocation2] sm:$0x1] %vm31_vm3, %v139_v26 }
 0x215   :  { %v145_v27 = vld [vmem:[#allocation2] sm:$0x1] }
 0x216   :  { %v147_v28 = vmul.f32 0.125, %v145_v27 }
 0x218   :  { %v148_v29 = vadd.f32 1.5e-11, %v147_v28 }
 0x21a   :  { %149 = vst.msk [vmem:[#allocation6] sm:$0x1] %vm31_vm3, %v148_v29 }
 0x21b   :  { %220 = shalt.err (!%p217_p12)
}
 0x21c   :  { %s221_s6 = scalar_lea.hbm %s300_s3, 16 }
 0x21d   :  { %p222_p13 = scmp.ne.s32.totalorder %s300_s3, %s221_s6  ;;  %p225_p0 = scmp.lt.u32.totalorder %s221_s6, %s300_s3 }
 0x21f   :  { %p227_p1 = pnand %p225_p0, %p222_p13 }
 0x221   :  { %230 = shalt.err (!%p227_p1)
}
 0x222   :  { %159 = dma.vmem_to_hbm [thread:$0]  %s157_s1, 16, %s300_s3, [#allocation5]  }
 0x223   :  { %233 = dma.done.wait [#allocation5], 16  }
 0x224   :  { %234 = vsyncadd [#allocation5], 4294967280 }
 0x225   :  { %163 = vsyncpa [#allocation4], 1 }
 0x226   :  { %164 = vsyncpa [#allocation5], 1 }

</bundles_post_ra>
